<compile_context>
chip_gen: v7x
topology: tpu7x:2x2x1
jax: 0.10.0
libtpu: 0.0.40
codegen_flags: <defaults>
</compile_context>

<pallas_src>
import jax
import jax.numpy as jnp
from jax.experimental import pallas as pl
from jax.experimental.pallas import tpu as pltpu


def _transition_kernel(x_ref, scale_ref, shift_ref, w_ref, o_ref):
    # x_ref:     (THo, 2, Wo, 2*Cin)  input dtype. For output row t, x_ref[t, h, wo, :]
    #            holds input pixels (2t+h, 2wo) and (2t+h, 2wo+1) concatenated on lanes.
    # scale_ref: (1, 2*Cin) f32  folded BN scale (gamma/sqrt(var+eps)), duplicated per W-phase.
    # shift_ref: (1, 2*Cin) f32  folded BN shift (beta - mean*scale), duplicated per W-phase.
    # w_ref:     (2*Cin, Cout)   1x1-conv weight in matmul form, 0.25 pool factor folded,
    #            duplicated per W-phase so the contraction also performs the W-pooling.
    # o_ref:     (THo, Wo, Cout)
    tho, _, wo, c2 = x_ref.shape
    cout = o_ref.shape[-1]

    # Hoisted once (not per pooling term); Mosaic keeps the (1,1,C) operands in a
    # sublane-replicated layout, so the per-use broadcast is not materialized.
    scale = scale_ref[...].reshape(1, 1, c2)
    shift = shift_ref[...].reshape(1, 1, c2)

    def bn_relu(h):
        # f32 elementwise on the VPU (upcast needed for bf16 inputs; v5e has no bf16 VALU).
        return jnp.maximum(x_ref[:, h].astype(jnp.float32) * scale + shift, 0.0)

    # H-direction pool (the other half of the 1/4 factor is folded into w_ref).
    yh = (bn_relu(0) + bn_relu(1)).astype(w_ref.dtype)          # (THo, Wo, 2*Cin)

    # Single MXU contraction for the whole block: M = THo*Wo, K = 2*Cin, f32 accumulation.
    # The duplicated weight halves make this contraction also do the W-direction pooling.
    # Leading-dim collapse keeps the minor (lane) dim intact -> cheap/free reshape.
    acc = jnp.dot(yh.reshape(tho * wo, c2), w_ref[...],
                  preferred_element_type=jnp.float32)           # (THo*Wo, Cout)
    o_ref[...] = acc.reshape(tho, wo, cout).astype(o_ref.dtype)


def _pick_vmem_limit():
    """~96 MiB on 128 MiB-VMEM parts (v5e/v6e), capped at ~48 MiB on 64 MiB parts (v7x)."""
    default = 48 * 1024 * 1024
    get_info = getattr(pltpu, "get_tpu_info", None)
    if get_info is None:
        return default
    try:
        cap = getattr(get_info(), "vmem_capacity_bytes", None)
    except Exception:
        return default
    if not cap:
        return default
    if cap >= 96 * 1024 * 1024:
        return 96 * 1024 * 1024
    return min(default, (cap * 3) // 4)


def _pick_out_row_tile(Ho, W, C_in, itemsize, n_batch, max_rows=32, target_bytes=4 << 20):
    """Largest divisor of Ho such that the per-step input block (THo*2*W*Cin*itemsize)
    stays ~<=4 MiB and THo <= 32.  Maximizing THo also maximizes the flattened matmul
    M = THo*Wo and amortizes the ~0.35us per-grid-step overhead; if the resulting grid
    would collapse to a single program, fall back so >=2 programs exist (keeps both
    TensorCores busy on 2-TC parts)."""
    divisors = [t for t in range(1, Ho + 1) if Ho % t == 0]
    cands = [t for t in divisors
             if t <= max_rows and t * 2 * W * C_in * itemsize <= target_bytes]
    if not cands:
        cands = [1]
    best = cands[-1]
    if n_batch * (Ho // best) < 2:
        for t in reversed(cands):
            if n_batch * (Ho // t) >= 2:
                best = t
                break
    return best


def transition_forward_nhwc(x_nhwc, gamma, beta, running_mean, running_var,
                            conv_weight, eps=1e-5, out_row_tile=None,
                            use_bf16_matmul=True):
    """Fast path: NHWC in, NHWC out, zero wrapper copies (reshapes only).
    conv_weight has PyTorch shape (Cout, Cin, 1, 1)."""
    N, H, W, C_in = x_nhwc.shape
    C_out = conv_weight.shape[0]
    # AvgPool2d(2,2) floor-drops odd trailing rows/cols; DenseNet transitions always see
    # even H, W, which is all this kernel handles.
    assert H % 2 == 0 and W % 2 == 0, (H, W)
    Ho, Wo = H // 2, W // 2

    # Fold inference BatchNorm into per-channel scale/shift.
    # TODO(synk): training-mode BatchNorm (batch statistics + running-stat updates) has no
    # clean single-kernel equivalent here; eval-mode folded BN only.
    scale = (gamma / jnp.sqrt(running_var + eps)).astype(jnp.float32)
    shift = (beta - running_mean * scale).astype(jnp.float32)
    scale2 = jnp.concatenate([scale, scale]).reshape(1, 2 * C_in)
    shift2 = jnp.concatenate([shift, shift]).reshape(1, 2 * C_in)

    # 1x1 conv weight -> (Cin, Cout) matmul form with the exact power-of-two 1/4 pool
    # factor folded in; duplicated along K so the contraction performs the W-pooling.
    mxu_dtype = jnp.bfloat16 if use_bf16_matmul else jnp.float32
    w_mat = (conv_weight.reshape(C_out, C_in).T * 0.25)
    w2 = jnp.concatenate([w_mat, w_mat], axis=0).astype(mxu_dtype)   # (2*Cin, Cout)

    itemsize = jnp.dtype(x_nhwc.dtype).itemsize
    THo = (_pick_out_row_tile(Ho, W, C_in, itemsize, N)
           if out_row_tile is None else out_row_tile)
    assert Ho % THo == 0, (THo, Ho)

    # Pure reshape (contiguous split of H and W axes) -- no HBM copy, no transpose.
    x_r = x_nhwc.reshape(N, Ho, 2, Wo, 2 * C_in)

    out_nhwc = pl.pallas_call(
        _transition_kernel,
        out_shape=jax.ShapeDtypeStruct((N, Ho, Wo, C_out), x_nhwc.dtype),
        grid=(N, Ho // THo),
        in_specs=[
            pl.BlockSpec((None, THo, 2, Wo, 2 * C_in), lambda n, t: (n, t, 0, 0, 0)),
            pl.BlockSpec((1, 2 * C_in), lambda n, t: (0, 0)),
            pl.BlockSpec((1, 2 * C_in), lambda n, t: (0, 0)),
            pl.BlockSpec((2 * C_in, C_out), lambda n, t: (0, 0)),
        ],
        out_specs=pl.BlockSpec((None, THo, Wo, C_out), lambda n, t: (n, t, 0, 0)),
        compiler_params=pltpu.CompilerParams(
            dimension_semantics=("parallel", "parallel"),
            vmem_limit_bytes=_pick_vmem_limit(),
        ),
    )(x_r, scale2, shift2, w2)
    return out_nhwc


def transition_forward(x_nchw, gamma, beta, running_mean, running_var,
                       conv_weight, eps=1e-5, out_row_tile=None, use_bf16_matmul=True):
    """NCHW-compat wrapper matching the PyTorch module's layout.  Pays one unavoidable
    NCHW<->NHWC transpose each way; networks that keep activations NHWC should call
    transition_forward_nhwc directly (zero extra HBM traffic)."""
    x_nhwc = jnp.transpose(x_nchw, (0, 2, 3, 1))
    out_nhwc = transition_forward_nhwc(x_nhwc, gamma, beta, running_mean, running_var,
                                       conv_weight, eps=eps, out_row_tile=out_row_tile,
                                       use_bf16_matmul=use_bf16_matmul)
    return jnp.transpose(out_nhwc, (0, 3, 1, 2))


def _reference(x_nchw, gamma, beta, running_mean, running_var, conv_weight, eps=1e-5):
    scale = gamma / jnp.sqrt(running_var + eps)
    shift = beta - running_mean * scale
    y = jnp.maximum(x_nchw * scale[None, :, None, None] + shift[None, :, None, None], 0.0)
    w2d = conv_weight.reshape(conv_weight.shape[0], conv_weight.shape[1])
    z = jnp.einsum('nchw,oc->nohw', y, w2d)
    n, co, h, w = z.shape
    return z.reshape(n, co, h // 2, 2, w // 2, 2).mean(axis=(3, 5))


if __name__ == "__main__":
    N, C_in, C_out, H, W = 2, 8, 4, 16, 16

    key = jax.random.PRNGKey(0)
    kx, kg, kb, km, kv, kw = jax.random.split(key, 6)
    x = jax.random.normal(kx, (N, C_in, H, W), dtype=jnp.float32)
    gamma = jax.random.uniform(kg, (C_in,), jnp.float32, 0.5, 1.5)
    beta = jax.random.normal(kb, (C_in,), dtype=jnp.float32) * 0.1
    running_mean = jax.random.normal(km, (C_in,), dtype=jnp.float32) * 0.1
    running_var = jax.random.uniform(kv, (C_in,), jnp.float32, 0.5, 1.5)
    conv_weight = jax.random.normal(kw, (C_out, C_in, 1, 1), dtype=jnp.float32) * 0.1

    ref = _reference(x, gamma, beta, running_mean, running_var, conv_weight)
    ref_nhwc = jnp.transpose(ref, (0, 2, 3, 1))

    # 1) NCHW-compatible path (same layout contract as the PyTorch module).
    out = transition_forward(x, gamma, beta, running_mean, running_var, conv_weight)
    out = jax.block_until_ready(out)
    assert out.shape == (N, C_out, H // 2, W // 2), out.shape
    # bf16 MXU operands with f32 accumulation -> loosened tolerance vs the f32 reference.
    assert jnp.allclose(out, ref, atol=2e-2, rtol=2e-2), float(jnp.max(jnp.abs(out - ref)))

    # 2) NHWC fast path (zero wrapper copies) — what a NHWC-resident network should call.
    x_nhwc = jnp.transpose(x, (0, 2, 3, 1))
    out_nhwc = jax.block_until_ready(
        transition_forward_nhwc(x_nhwc, gamma, beta, running_mean, running_var, conv_weight))
    assert out_nhwc.shape == (N, H // 2, W // 2, C_out), out_nhwc.shape
    assert jnp.allclose(out_nhwc, ref_nhwc, atol=2e-2, rtol=2e-2), \
        float(jnp.max(jnp.abs(out_nhwc - ref_nhwc)))

    # 3) bf16 activations in / bf16 out (halves the dominant HBM read on a mem-bound layer).
    out_bf16 = jax.block_until_ready(
        transition_forward_nhwc(x_nhwc.astype(jnp.bfloat16), gamma, beta,
                                running_mean, running_var, conv_weight))
    assert out_bf16.dtype == jnp.bfloat16
    assert jnp.allclose(out_bf16.astype(jnp.float32), ref_nhwc, atol=5e-2, rtol=5e-2), \
        float(jnp.max(jnp.abs(out_bf16.astype(jnp.float32) - ref_nhwc)))

    print("KERNEL_OK")
</pallas_src>

<mosaic_0001>
module attributes {stable_mosaic.version = 11 : i64} {
  func.func @_transition_kernel(%arg0: i32, %arg1: i32, %arg2: memref<1x8x2x8x16xf32, #tpu.memory_space<vmem>>, %arg3: memref<1x16xf32, #tpu.memory_space<vmem>>, %arg4: memref<1x16xf32, #tpu.memory_space<vmem>>, %arg5: memref<16x4xbf16, #tpu.memory_space<vmem>>, %arg6: memref<1x8x8x4xf32, #tpu.memory_space<vmem>>) attributes {dimension_semantics = [#tpu.dimension_semantics<parallel>, #tpu.dimension_semantics<parallel>], iteration_bounds = array<i64: 2, 1>, scalar_prefetch = 0 : i64, scratch_operands = 0 : i64, tpu.core_type = #tpu.core_type<tc>, window_params = [{transform_indices = @transform_0, window_bounds = array<i64: 1, 8, 2, 8, 16>}, {pipeline_mode = #tpu.pipeline_mode<synchronous>, transform_indices = @transform_1, window_bounds = array<i64: 1, 16>}, {pipeline_mode = #tpu.pipeline_mode<synchronous>, transform_indices = @transform_2, window_bounds = array<i64: 1, 16>}, {pipeline_mode = #tpu.pipeline_mode<synchronous>, transform_indices = @transform_3, window_bounds = array<i64: 16, 4>}, {transform_indices = @transform_4, window_bounds = array<i64: 1, 8, 8, 4>}]} {
    %c0 = arith.constant 0 : index
    %c0_0 = arith.constant 0 : index
    %0 = vector.load %arg3[%c0, %c0_0] : memref<1x16xf32, #tpu.memory_space<vmem>>, vector<1x16xf32>
    %1 = vector.shape_cast %0 : vector<1x16xf32> to vector<1x1x16xf32>
    %c0_1 = arith.constant 0 : index
    %c0_2 = arith.constant 0 : index
    %2 = vector.load %arg4[%c0_1, %c0_2] : memref<1x16xf32, #tpu.memory_space<vmem>>, vector<1x16xf32>
    %3 = vector.shape_cast %2 : vector<1x16xf32> to vector<1x1x16xf32>
    %c0_3 = arith.constant 0 : index
    %c0_4 = arith.constant 0 : index
    %c0_5 = arith.constant 0 : index
    %c0_6 = arith.constant 0 : index
    %c0_7 = arith.constant 0 : index
    %4 = vector.load %arg2[%c0_3, %c0_4, %c0_5, %c0_6, %c0_7] : memref<1x8x2x8x16xf32, #tpu.memory_space<vmem>>, vector<1x8x1x8x16xf32>
    %5 = vector.shape_cast %4 : vector<1x8x1x8x16xf32> to vector<8x8x16xf32>
    %6 = vector.broadcast %1 : vector<1x1x16xf32> to vector<8x8x16xf32>
    %7 = arith.mulf %5, %6 : vector<8x8x16xf32>
    %8 = vector.broadcast %3 : vector<1x1x16xf32> to vector<8x8x16xf32>
    %9 = arith.addf %7, %8 : vector<8x8x16xf32>
    %cst = arith.constant 0.000000e+00 : f32
    %10 = vector.broadcast %cst : f32 to vector<8x8x16xf32>
    %11 = arith.maximumf %9, %10 : vector<8x8x16xf32>
    %c0_8 = arith.constant 0 : index
    %c0_9 = arith.constant 0 : index
    %c1 = arith.constant 1 : index
    %c0_10 = arith.constant 0 : index
    %c0_11 = arith.constant 0 : index
    %12 = vector.load %arg2[%c0_8, %c0_9, %c1, %c0_10, %c0_11] : memref<1x8x2x8x16xf32, #tpu.memory_space<vmem>>, vector<1x8x1x8x16xf32>
    %13 = vector.shape_cast %12 : vector<1x8x1x8x16xf32> to vector<8x8x16xf32>
    %14 = vector.broadcast %1 : vector<1x1x16xf32> to vector<8x8x16xf32>
    %15 = arith.mulf %13, %14 : vector<8x8x16xf32>
    %16 = vector.broadcast %3 : vector<1x1x16xf32> to vector<8x8x16xf32>
    %17 = arith.addf %15, %16 : vector<8x8x16xf32>
    %cst_12 = arith.constant 0.000000e+00 : f32
    %18 = vector.broadcast %cst_12 : f32 to vector<8x8x16xf32>
    %19 = arith.maximumf %17, %18 : vector<8x8x16xf32>
    %20 = arith.addf %11, %19 : vector<8x8x16xf32>
    %21 = arith.truncf %20 : vector<8x8x16xf32> to vector<8x8x16xbf16>
    %22 = vector.shape_cast %21 : vector<8x8x16xbf16> to vector<64x16xbf16>
    %c0_13 = arith.constant 0 : index
    %c0_14 = arith.constant 0 : index
    %23 = vector.load %arg5[%c0_13, %c0_14] : memref<16x4xbf16, #tpu.memory_space<vmem>>, vector<16x4xbf16>
    %cst_15 = arith.constant dense<0.000000e+00> : vector<64x4xf32>
    %24 = tpu.matmul %22, %23, %cst_15 {dimension_numbers = #tpu.dot_dimension_numbers<[1], [0], [0], [1], [0, 0, 1, 1], [], []>} : vector<64x16xbf16>, vector<16x4xbf16>, vector<64x4xf32> -> vector<64x4xf32>
    %25 = vector.shape_cast %24 : vector<64x4xf32> to vector<8x8x4xf32>
    %c0_16 = arith.constant 0 : index
    %c0_17 = arith.constant 0 : index
    %c0_18 = arith.constant 0 : index
    %c0_19 = arith.constant 0 : index
    %26 = vector.load %arg6[%c0_16, %c0_17, %c0_18, %c0_19] : memref<1x8x8x4xf32, #tpu.memory_space<vmem>>, vector<1x8x8x4xf32>
    %27 = vector.shape_cast %26 : vector<1x8x8x4xf32> to vector<8x8x4xf32>
    %28 = vector.shape_cast %25 : vector<8x8x4xf32> to vector<1x8x8x4xf32>
    tpu.vector_store %arg6[%c0_16, %c0_17, %c0_18, %c0_19], %28 {strides = array<i32>} : memref<1x8x8x4xf32, #tpu.memory_space<vmem>>, vector<1x8x8x4xf32>,
    return
  }
  func.func @transform_0(%arg0: i32, %arg1: i32) -> (i32, i32, i32, i32, i32) {
    %c0_i32 = arith.constant 0 : i32
    %c0_i32_0 = arith.constant 0 : i32
    %c0_i32_1 = arith.constant 0 : i32
    %c0_i32_2 = arith.constant 0 : i32
    return %arg0, %arg1, %c0_i32, %c0_i32_0, %c0_i32_1 : i32, i32, i32, i32, i32
  }
  func.func @transform_1(%arg0: i32, %arg1: i32) -> (i32, i32) {
    %c0_i32 = arith.constant 0 : i32
    %c0_i32_0 = arith.constant 0 : i32
    %c0_i32_1 = arith.constant 0 : i32
    return %c0_i32, %c0_i32_0 : i32, i32
  }
  func.func @transform_2(%arg0: i32, %arg1: i32) -> (i32, i32) {
    %c0_i32 = arith.constant 0 : i32
    %c0_i32_0 = arith.constant 0 : i32
    %c0_i32_1 = arith.constant 0 : i32
    return %c0_i32, %c0_i32_0 : i32, i32
  }
  func.func @transform_3(%arg0: i32, %arg1: i32) -> (i32, i32) {
    %c0_i32 = arith.constant 0 : i32
    %c0_i32_0 = arith.constant 0 : i32
    %c0_i32_1 = arith.constant 0 : i32
    return %c0_i32, %c0_i32_0 : i32, i32
  }
  func.func @transform_4(%arg0: i32, %arg1: i32) -> (i32, i32, i32, i32) {
    %c0_i32 = arith.constant 0 : i32
    %c0_i32_0 = arith.constant 0 : i32
    %c0_i32_1 = arith.constant 0 : i32
    return %arg0, %arg1, %c0_i32, %c0_i32_0 : i32, i32, i32, i32
  }
}

</mosaic_0001>

<bundles_post_ra>
// kernel: tpu_custom_call.1
= control target key start
LH: loop header
LB: loop body
LE: loop exit
PB: predicated region body
PF: predicated region fallthrough
CT: control target
= control target key end

     0   :  { %9 = vsyncpa [#allocation3], 0  ;;  %s975_s0 = inlined_call_operand.hbm [shape: f32[2,8,2,8,16], index: 0, kind: input, shape index: {}]   ;;  %s976_s1 = inlined_call_operand.vmem [shape: f32[1,16], index: 1, kind: input, shape index: {}]   ;;  %s977_s2 = inlined_call_operand.vmem [shape: f32[1,16], index: 2, kind: input, shape index: {}]   ;;  %s978_s3 = inlined_call_operand.vmem [shape: bf16[16,4], index: 3, kind: input, shape index: {}]   ;;  %s979_s4 = inlined_call_operand.vmem [shape: f32[2,8,8,4], index: 4, kind: output, shape index: {}]  }
   0x1   :  { %11 = vsyncpa [#allocation3 + $0x1], 0  ;;  %s776_s15 = smov 0   ;;  %s778_s16 = smov 0  }
   0x2   :  { %s780_s17 = smov 0   ;;  %s782_s18 = smov 0  }
   0x3   :  { %s784_s19 = smov 0   ;;  %s786_s20 = smov 0  }
   0x4 LB: > { %s553_s21 = sadd.s32 4294967295, %s746_s20   ;;  %s29_s22 = sadd.s32 1, %s742_s19  ;;  %s746_s20 = sphi %s786_s20, %s17_s20   ;;  %s742_s19 = sphi %s784_s19, %s987_s19   ;;  %s738_s18 = sphi %s782_s18, %s986_s18   ;;  %s734_s17 = sphi %s780_s17, %s985_s17   ;;  %s730_s16 = sphi %s778_s16, %s984_s16   ;;  %s726_s15 = sphi %s776_s15, %s983_s15  }
   0x5   : > { %p31_p0 = scmp.ge.s32.totalorder %s29_s22, 2  ;;  %s38_s23 = sadd.s32 1, %s734_s17 }
   0x6   : > { %p45_p1 = scmp.ne.s32.totalorder %s734_s17, %s730_s16  ;;  %p46_p2 = scmp.eq.s32.totalorder %s746_s20, 0 }
   0x7   : > { %s989_s22 = smov (%p31_p0, %s29_s22), 0  ;;  %p51_p4 = scmp.ne.s32.totalorder %s730_s16, %s726_s15 }
   0x8   : > { %p812_p3 = por %p46_p2, %p45_p1  ;;  %s33_s25 = ssub.s32 %s742_s19, %s989_s22 }
   0x9   : > { %p52_p5 = scmp.eq.s32.totalorder %s553_s21, 0  ;;  %p36_p6 = scmp.eq.s32.totalorder %s33_s25, 0 }
   0xa   : > { %p614_p8 = scmp.lt.s32.totalorder %s746_s20, 2  ;;  %s175_s28 = sand.u32 1, %s734_s17  }
   0xb   : > { %p819_p7 = por %p52_p5, %p51_p4  ;;  %s585_s29 = sshll.u32 %s742_s19, 11 }
   0xc   : > { %s825_s27 = scalar_select %p36_p6, %s734_s17, %s38_s23  }
   0xd   : > { %s557_s30 = sshll.u32 %s175_s28, 7  ;;  %s832_s7 = scalar_lea.hbm %s975_s0, %s585_s29 }
   0xe   : > { %s179_s8 = scalar_lea.vmem [#allocation2], %s557_s30  ;;  %p836_p9 = pnand %p614_p8, %p812_p3 }
   0xf   : > { %s189_s9 = sshll.u32 %s179_s8, 4  ;;  %s842_s11 = scalar_lea.sflag [#allocation3], %s175_s28  ;;  %s840_s9 = int_to_ptr.vmem [resolvable:$true] %s189_s9 }
  0x10   : > { %s666_s12 = scalar_lea.hbm %s832_s7, 2048  ;;  %p668_p11 = pneg %p836_p9 }
  0x11   : > { %p667_p10 = scmp.ne.s32.totalorder %s832_s7, %s666_s12  ;;  %s671_s15 = scalar_lea.hbm %s975_s0, 4096 }
  0x12   : > { %p672_p0 = scmp.lt.u32.totalorder %s832_s7, %s975_s0  ;;  %p673_p1 = scmp.lt.u32.totalorder %s671_s15, %s666_s12 }
  0x13   : > { %p669_p12 = pnand %p668_p11, %p667_p10  ;;  %p675_p3 = scmp.lt.u32.totalorder %s666_s12, %s832_s7 }
  0x14   : > { %p674_p2 = por %p673_p1, %p672_p0 }
  0x15   : > { %p670_p13 = pneg %p669_p12 }
  0x16   : > { %p676_p4 = por %p675_p3, %p674_p2 }
  0x18   : > { %p677_p5 = pnand %p676_p4, %p670_p13 }
  0x1a   : > { %680 = shalt.err (!%p677_p5)
}
  0x1b   : > { %s681_s24 = scalar_lea.vmem %s840_s9, 2048  ;;  %s748_s25 = smov [#allocation2]  }
  0x1c   : > { %p682_p6 = scmp.ne.s32.totalorder %s840_s9, %s681_s24  ;;  %s686_s28 = sshll.u32 %s748_s25, 4  ;;  %s687_s28 = int_to_ptr.vmem [resolvable:$false] %s686_s28 }
  0x1d   : > { %s688_s29 = scalar_lea.vmem %s687_s28, 4096  ;;  %p689_p12 = scmp.lt.s32.totalorder %s840_s9, %s687_s28 }
  0x1e   : > { %p684_p8 = pnand %p682_p6, %p668_p11  ;;  %p690_p0 = scmp.lt.s32.totalorder %s688_s29, %s681_s24 }
  0x20   : > { %p685_p10 = pneg %p684_p8  ;;  %p691_p1 = por %p690_p0, %p689_p12 }
  0x22   : > { %p692_p2 = pnand %p691_p1, %p685_p10 }
  0x24   : > { %695 = shalt.err (!%p692_p2)
}
  0x25   : > { %s749_s30 = smov 128   ;;  %s750_s5 = smov 8  }
  0x26   : > { %613 = dma.hbm_to_vmem [thread:$0]  (!%p836_p9), %s832_s7, 2048, %s840_s9, %s842_s11, %s749_s30, %s749_s30, %s750_s5  }
  0x27   : > { %p560_p11 = scmp.ge.s32.totalorder %s746_s20, 1  ;;  %p197_p13 = scmp.lt.s32.totalorder %s746_s20, 3 }
  0x29   : > { %p198_p3 = pnand %p560_p11, %p197_p13 }
  0x2a   : > { %s203_s6 = sand.u32 (!%p198_p3), 1, %s730_s16  }
  0x2b   : > { %201 = sbr.rel (%p198_p3) target bundleno = 291 (0x123), region = 36  ;;  %s561_s8 = sshll.u32 (!%p198_p3), %s203_s6, 7 }
  0x2c   : > { %s204_s12 = scalar_lea.sflag (!%p198_p3), [#allocation3], %s203_s6  ;;  %s873_s13 = scalar_lea.vmem (!%p198_p3), [#allocation2], %s561_s8 }
  0x32   : > { %721 = dma.done.wait (%p819_p7), %s204_s12, 2048  }
  0x33   : > { %723 = vsyncadd (%p819_p7), %s204_s12, 4294965248  ;;  %v665_v0 = vld [vmem:[%s978_s3] sm:$0xff]   ;;  %v251_v4 = vld [vmem:[%s873_s13 + $0x10] sm:$0xff]  ;;  %vm371_vm0 = vcmask 130048   ;;  %p238_p7 = scmp.lt.s32.totalorder %s738_s18, 1  ;;  %vm449_vm1 = vcmask 31744  }
  0x34   : > { %v885_v1 = vld [vmem:[%s976_s1] ss:$0 sm:$0xff]  ;;  %596 = vmatprep.subr.bf16.mxu0 %v665_v0  ;;  %606 = vmatprep.subr.bf16.mxu1 %v665_v0  ;;  %v566_v6 = vld [vmem:[%s873_s13 + $0x8] sm:$0xff]  ;;  %v567_v7 = vld [vmem:[%s873_s13 + $0x18] sm:$0xff] }
  0x35   : > { %v890_v2 = vld [vmem:[%s977_s2] ss:$0 sm:$0xff]  ;;  %597 = vmatpush3.bf16.msra.mxu0 %v665_v0  ;;  %607 = vmatpush3.bf16.msra.mxu1 %v665_v0  ;;  %v265_v8 = vmul.f32 %v885_v1, %v251_v4  ;;  %v303_v9 = vmul.f32 %v566_v6, %v885_v1  ;;  %v304_v10 = vmul.f32 %v567_v7, %v885_v1  ;;  %v255_v12 = vld [vmem:[%s873_s13 + $0x50] sm:$0xff]  ;;  %v570_v13 = vld [vmem:[%s873_s13 + $0x48] sm:$0xff]  ;;  %s991_s18 = smov (!%p238_p7, %s738_s18), 1 }
  0x36   : > { %v250_v3 = vld [vmem:[%s873_s13] sm:$0xff]  ;;  %v269_v16 = vmul.f32 %v885_v1, %v255_v12  ;;  %v571_v17 = vld [vmem:[%s873_s13 + $0x58] sm:$0xff]  ;;  %v307_v18 = vmul.f32 %v570_v13, %v885_v1  ;;  %v253_v28 = vld [vmem:[%s873_s13 + $0x30] sm:$0xff]  ;;  %s586_s26 = sshll.u32 %s991_s18, 6 }
  0x37   : > { %v264_v5 = vmul.f32 %v885_v1, %v250_v3  ;;  %v254_v11 = vld [vmem:[%s873_s13 + $0x40] sm:$0xff]  ;;  %v279_v19 = vadd.f32 %v890_v2, %v265_v8  ;;  %v311_v20 = vadd.f32 %v890_v2, %v303_v9  ;;  %v312_v21 = vadd.f32 %v890_v2, %v304_v10  ;;  %v568_v33 = vld [vmem:[%s873_s13 + $0x28] sm:$0xff]  ;;  %v569_v34 = vld [vmem:[%s873_s13 + $0x38] sm:$0xff]  ;;  %s245_s24 = scalar_lea.vmem %s979_s4, %s586_s26 }
  0x38   : > { %v268_v15 = vmul.f32 %v885_v1, %v254_v11  ;;  %v308_v22 = vmul.f32 %v571_v17, %v885_v1  ;;  %v252_v23 = vld [vmem:[%s873_s13 + $0x20] sm:$0xff]  ;;  %v283_v26 = vadd.f32 %v890_v2, %v269_v16  ;;  %v315_v27 = vadd.f32 %v890_v2, %v307_v18  ;;  %v257_v44 = vld [vmem:[%s873_s13 + $0x70] sm:$0xff]  ;;  %v572_v49 = vld [vmem:[%s873_s13 + $0x68] sm:$0xff] }
  0x39   : > { %v278_v14 = vadd.f32 %v890_v2, %v264_v5  ;;  %v287_v29 = vmax.f32 %v279_v19, 0.0  ;;  %v319_v30 = vmax.f32 %v311_v20, 0.0  ;;  %v320_v31 = vmax.f32 %v312_v21, 0.0  ;;  %v256_v39 = vld [vmem:[%s873_s13 + $0x60] sm:$0xff]  ;;  %v573_v54 = vld [vmem:[%s873_s13 + $0x78] sm:$0xff] }
  0x3a   : > { %v282_v25 = vadd.f32 %v890_v2, %v268_v15  ;;  %v316_v32 = vadd.f32 %v890_v2, %v308_v22  ;;  %v291_v36 = vmax.f32 %v283_v26, 0.0  ;;  %v323_v37 = vmax.f32 %v315_v27, 0.0 }
  0x3b   : > { %v286_v24 = vmax.f32 %v278_v14, 0.0  ;;  %v266_v38 = vmul.f32 %v885_v1, %v252_v23  ;;  %v328_v41 = vadd.f32 %v320_v31, %v287_v29  ;;  %v267_v43 = vmul.f32 %v885_v1, %v253_v28 }
  0x3c   : > { %v290_v35 = vmax.f32 %v282_v25, 0.0  ;;  %v324_v42 = vmax.f32 %v316_v32, 0.0  ;;  %v305_v47 = vmul.f32 %v568_v33, %v885_v1  ;;  %v306_v48 = vmul.f32 %v569_v34, %v885_v1 }
  0x3d   : > { %v327_v40 = vadd.f32 %v319_v30, %v286_v24  ;;  %v280_v46 = vadd.f32 %v890_v2, %v266_v38  ;;  %v281_v52 = vadd.f32 %v890_v2, %v267_v43  ;;  %v270_v53 = vmul.f32 %v885_v1, %v256_v39 }
  0x3e   : > { %v331_v45 = vadd.f32 %v323_v37, %v290_v35  ;;  %v332_v51 = vadd.f32 %v324_v42, %v291_v36  ;;  %v313_v56 = vadd.f32 %v890_v2, %v305_v47  ;;  %v314_v57 = vadd.f32 %v890_v2, %v306_v48 }
  0x3f   : > { %v587_v50 = vpack.c.bf16 %v328_v41, %v327_v40  ;;  %v288_v55 = vmax.f32 %v280_v46, 0.0  ;;  %v271_v58 = vmul.f32 %v885_v1, %v257_v44  ;;  %v289_v60 = vmax.f32 %v281_v52, 0.0 }
  0x40   : > { %v589_v59 = vpack.c.bf16 %v332_v51, %v331_v45  ;;  %v284_v61 = vadd.f32 %v890_v2, %v270_v53  ;;  %v309_v62 = vmul.f32 %v572_v49, %v885_v1  ;;  %v321_v63 = vmax.f32 %v313_v56, 0.0 }
  0x41   : > { %598 = vmatprep.mubr.msk.bf16.mxu0 %vm371_vm0, %v587_v50  ;;  %v322_v0 = vmax.f32 %v314_v57, 0.0  ;;  %v285_v3 = vadd.f32 %v890_v2, %v271_v58  ;;  %v310_v4 = vmul.f32 %v573_v54, %v885_v1 }
  0x42   : > { %602 = vmatprep.mubr.msk.bf16.mxu1 %vm371_vm0, %v589_v59  ;;  %v292_v5 = vmax.f32 %v284_v61, 0.0  ;;  %v317_v6 = vadd.f32 %v890_v2, %v309_v62  ;;  %v329_v7 = vadd.f32 %v321_v63, %v288_v55 }
  0x43   : > { %v330_v8 = vadd.f32 %v322_v0, %v289_v60  ;;  %v293_v9 = vmax.f32 %v285_v3, 0.0  ;;  %v318_v10 = vadd.f32 %v890_v2, %v310_v4 }
  0x44   : > { %v325_v11 = vmax.f32 %v317_v6, 0.0 }
  0x45   : > { %v588_v12 = vpack.c.bf16 %v330_v8, %v329_v7  ;;  %v326_v13 = vmax.f32 %v318_v10, 0.0 }
  0x46   : > { %v333_v14 = vadd.f32 %v325_v11, %v292_v5 }
  0x47   : > { %599 = vmatmul.mubr.msk.bf16.vlgmr.msra.gmra.mrb[0].mxu0 %vm371_vm0, %v588_v12  ;;  %v334_v15 = vadd.f32 %v326_v13, %v293_v9 }
  0x49   : > { %v590_v1 = vpack.c.bf16 %v334_v15, %v333_v14 }
  0x4b   : > { %603 = vmatmul.mubr.msk.bf16.vlgmr.msra.gmra.mrb[0].mxu1 %vm371_vm0, %v590_v1 }
 0x11a   : > { %v600_v16 = vpop.f32.mrb[0].mxu0 }
 0x11b   : > { %452 = vst.msk [vmem:[%s245_s24 + $0x10] sm:$0xff] %vm449_vm1, %v600_v16  ;;  %v418_v2 = vpop.f32.mrb[1].mxu0 }
 0x11c   : > { %450 = vst.msk [vmem:[%s245_s24] sm:$0xff] %vm449_vm1, %v418_v2  ;;  %v601_v17 = vpop.f32.mrb[2].mxu0 }
 0x11d   : > { %453 = vst.msk [vmem:[%s245_s24 + $0x18] sm:$0xff] %vm449_vm1, %v601_v17  ;;  %v421_v18 = vpop.f32.mrb[3].mxu0 }
 0x11e   : > { %v604_v19 = vpop.f32.mrb[0].mxu1  ;;  %451 = vst.msk [vmem:[%s245_s24 + $0x8] sm:$0xff] %vm449_vm1, %v421_v18 }
 0x11f   : > { %456 = vst.msk [vmem:[%s245_s24 + $0x30] sm:$0xff] %vm449_vm1, %v604_v19  ;;  %v434_v20 = vpop.f32.mrb[1].mxu1 }
 0x120   : > { %454 = vst.msk [vmem:[%s245_s24 + $0x20] sm:$0xff] %vm449_vm1, %v434_v20  ;;  %v605_v21 = vpop.f32.mrb[2].mxu1 }
 0x121   : > { %457 = vst.msk [vmem:[%s245_s24 + $0x38] sm:$0xff] %vm449_vm1, %v605_v21  ;;  %v437_v22 = vpop.f32.mrb[3].mxu1 }
 0x122   : > { %455 = vst.msk [vmem:[%s245_s24 + $0x28] sm:$0xff] %vm449_vm1, %v437_v22 }
 0x123 PF: > { %s17_s20 = sadd.s32 1, %s746_s20   ;;  %s983_s15 = smov %s730_s16 }
 0x124   : > { %p14_p9 = scmp.ge.s32.totalorder %s17_s20, 4   ;;  %s984_s16 = smov %s734_s17 }
 0x125   : > { %s985_s17 = smov %s825_s27  ;;  %s986_s18 = smov %s742_s19 }
 0x126   : > { %s987_s19 = smov %s989_s22  ;;  %16 = sbr.rel (!%p14_p9) target bundleno = 4 (0x4), region = 77 }
 0x12d   :  { %488 = vsyncpa [#allocation3], 1 }
 0x12e   :  { %490 = vsyncpa [#allocation3 + $0x1], 1 }

</bundles_post_ra>
